<compile_context>
chip_gen: v7x
topology: tpu7x:2x2x1
jax: 0.10.0
libtpu: 0.0.40
codegen_flags: <defaults>
</compile_context>

<pallas_src>
import jax
import jax.numpy as jnp
from jax.experimental import pallas as pl
from jax.experimental.pallas import tpu as pltpu


def _round_up(x, m):
    return ((x + m - 1) // m) * m


def _tensorcores_per_chip():
    """Best-effort query of TensorCores per chip (v7x=2, v5e/v6e=1)."""
    try:
        info = pltpu.get_tpu_info()
        for attr in ("num_tensorcores", "num_cores", "tensorcores_per_chip",
                     "cores_per_chip"):
            v = getattr(info, attr, None)
            if v:
                return int(v)
    except Exception:
        pass
    try:
        return int(getattr(jax.devices()[0], "num_cores", 1) or 1)
    except Exception:
        return 1


def _generator_kernel(x_ref, w1_ref, b1_ref, w2_ref, b2_ref, w3_ref, b3_ref, o_ref):
    # Cast x to bf16 in-kernel (MXU-native rate); accumulate in f32.
    x = x_ref[...].astype(jnp.bfloat16)
    h1 = jnp.dot(x, w1_ref[...], preferred_element_type=jnp.float32)
    h1 = jnp.maximum(h1 + b1_ref[...], 0.0)
    # Layer 2: cast activation to bf16 only for the dot; epilogue stays f32
    # (v5e has no bf16 VPU).
    h2 = jnp.dot(h1.astype(jnp.bfloat16), w2_ref[...],
                 preferred_element_type=jnp.float32)
    h2 = jnp.maximum(h2 + b2_ref[...], 0.0)
    # Layer 3: Linear, no activation.
    out = jnp.dot(h2.astype(jnp.bfloat16), w3_ref[...],
                  preferred_element_type=jnp.float32)
    o_ref[...] = (out + b3_ref[...]).astype(o_ref.dtype)


def prepare_generator_params(params):
    """One-time weight cast to bf16 (MXU-native); biases stay f32 with shape
    (1, out). Call once and reuse so the casts are hoisted out of the
    per-forward-call path."""
    prepped = {}
    for i in (1, 2, 3):
        prepped[f"w{i}"] = jnp.asarray(params[f"w{i}"]).astype(jnp.bfloat16)
        prepped[f"b{i}"] = (jnp.asarray(params[f"b{i}"])
                            .astype(jnp.float32).reshape(1, -1))
    return prepped


def generator_forward(x, params, *, batch_tile=1024):
    """Fused 3-layer MLP forward.
    x: (B, input_dim) float32.
    params: output of prepare_generator_params (bf16 (in, out) weights,
    f32 (1, out) biases). Raw f32 params are also accepted (cast on the fly)."""
    if params["w1"].dtype != jnp.bfloat16:
        params = prepare_generator_params(params)
    w1, b1 = params["w1"], params["b1"]
    w2, b2 = params["w2"], params["b2"]
    w3, b3 = params["w3"], params["b3"]

    B, d_in = x.shape
    d_h1 = w1.shape[1]
    d_h2 = w2.shape[1]
    d_out = w3.shape[1]

    # ---- batch tiling (no batch padding; last block may be ragged) ---------
    bt = _round_up(min(batch_tile, max(B, 1)), 8)
    if _tensorcores_per_chip() > 1:
        # v7x: want >= 4 grid steps (>= 2 pipelined steps per TensorCore)
        # when the batch permits; otherwise leave the tile as-is.
        cap = (((B - 1) // 3) // 8) * 8      # largest mult-of-8 bt with cdiv(B,bt) >= 4
        if cap >= 8:
            bt = min(bt, cap)
    grid = (pl.cdiv(B, bt),)

    # ---- rough VMEM budget (resident weights + double-buffered x/out tiles
    #      + f32 intermediates); explicit limit matters on v5e (16 MiB default),
    #      capped at 48 MiB for headroom under v7x's 64 MiB VMEM. -------------
    weight_bytes = 2 * 2 * (w1.size + w2.size + w3.size) \
                   + 2 * 4 * (b1.size + b2.size + b3.size)
    act_bytes = 2 * bt * d_in * 4 + 2 * bt * d_out * 4 \
                + 2 * bt * (d_h1 + d_h2) * 4
    vmem_limit = int(min(48 * 1024 * 1024,
                         max(32 * 1024 * 1024, 2 * (weight_bytes + act_bytes))))

    # ---- advisory cost estimate so XLA can overlap neighbours ---------------
    flops = 2 * B * (d_in * d_h1 + d_h1 * d_h2 + d_h2 * d_out)
    bytes_accessed = (B * d_in * 4 + B * d_out * 4
                      + 2 * (w1.size + w2.size + w3.size)
                      + 4 * (b1.size + b2.size + b3.size))
    cost = pl.CostEstimate(flops=int(flops), transcendentals=0,
                           bytes_accessed=int(bytes_accessed))

    # Weights/biases: constant index_map -> resident in VMEM across the grid.
    full = lambda shape: pl.BlockSpec(shape, lambda i: (0, 0))

    return pl.pallas_call(
        _generator_kernel,
        out_shape=jax.ShapeDtypeStruct((B, d_out), jnp.float32),
        grid_spec=pltpu.PrefetchScalarGridSpec(
            num_scalar_prefetch=0,
            grid=grid,
            in_specs=[
                pl.BlockSpec((bt, d_in), lambda i: (i, 0)),  # x tile (f32)
                full((d_in, d_h1)),    # w1 (bf16)
                full((1, d_h1)),       # b1 (f32)
                full((d_h1, d_h2)),    # w2 (bf16)
                full((1, d_h2)),       # b2 (f32)
                full((d_h2, d_out)),   # w3 (bf16)
                full((1, d_out)),      # b3 (f32)
            ],
            out_specs=pl.BlockSpec((bt, d_out), lambda i: (i, 0)),
        ),
        compiler_params=pltpu.CompilerParams(
            dimension_semantics=("parallel",),
            vmem_limit_bytes=vmem_limit),
        cost_estimate=cost,
    )(x, w1, b1, w2, b2, w3, b3)


def init_generator_params(key, input_dim, output_dim):
    """Deterministic init mimicking PyTorch nn.Linear default
    (U[-1/sqrt(fan_in), 1/sqrt(fan_in)]). Weights stored transposed: (in, out)."""
    dims = [(input_dim, 128), (128, 256), (256, output_dim)]
    params = {}
    for idx, (fan_in, fan_out) in enumerate(dims, start=1):
        key, kw, kb = jax.random.split(key, 3)
        bound = 1.0 / jnp.sqrt(jnp.float32(fan_in))
        params[f"w{idx}"] = jax.random.uniform(
            kw, (fan_in, fan_out), jnp.float32, minval=-bound, maxval=bound)
        params[f"b{idx}"] = jax.random.uniform(
            kb, (1, fan_out), jnp.float32, minval=-bound, maxval=bound)
    return params


def generator_reference(x, params):
    """Plain-JAX f32 reference of the same forward pass."""
    h = jnp.maximum(x @ params["w1"] + params["b1"], 0.0)
    h = jnp.maximum(h @ params["w2"] + params["b2"], 0.0)
    return h @ params["w3"] + params["b3"]


if __name__ == "__main__":
    INPUT_DIM = 32   # latent/noise dimension
    OUTPUT_DIM = 64  # generated sample dimension
    BATCH = 64       # small demo batch

    key = jax.random.PRNGKey(0)
    key, kx = jax.random.split(key)
    x = jax.random.normal(kx, (BATCH, INPUT_DIM), dtype=jnp.float32)
    params = init_generator_params(key, INPUT_DIM, OUTPUT_DIM)
    gen_params = prepare_generator_params(params)   # hoisted one-time cast

    out = generator_forward(x, gen_params)
    out = jax.block_until_ready(out)

    ref = generator_reference(x, params)
    assert out.shape == (BATCH, OUTPUT_DIM)
    # bf16 MXU inputs -> compare against the f32 reference with bf16-level tolerance.
    assert jnp.allclose(out, ref, atol=5e-2, rtol=5e-2), "mismatch vs reference"

    print("KERNEL_OK")
</pallas_src>

<mosaic_0001>
module attributes {stable_mosaic.version = 11 : i64} {
  func.func @_generator_kernel(%arg0: i32, %arg1: memref<64x32xf32, #tpu.memory_space<vmem>>, %arg2: memref<32x128xbf16, #tpu.memory_space<vmem>>, %arg3: memref<1x128xf32, #tpu.memory_space<vmem>>, %arg4: memref<128x256xbf16, #tpu.memory_space<vmem>>, %arg5: memref<1x256xf32, #tpu.memory_space<vmem>>, %arg6: memref<256x64xbf16, #tpu.memory_space<vmem>>, %arg7: memref<1x64xf32, #tpu.memory_space<vmem>>, %arg8: memref<64x64xf32, #tpu.memory_space<vmem>>) attributes {dimension_semantics = [#tpu.dimension_semantics<parallel>], iteration_bounds = array<i64: 1>, scalar_prefetch = 0 : i64, scratch_operands = 0 : i64, tpu.core_type = #tpu.core_type<tc>, window_params = [{transform_indices = @transform_0, window_bounds = array<i64: 64, 32>}, {pipeline_mode = #tpu.pipeline_mode<synchronous>, transform_indices = @transform_1, window_bounds = array<i64: 32, 128>}, {pipeline_mode = #tpu.pipeline_mode<synchronous>, transform_indices = @transform_2, window_bounds = array<i64: 1, 128>}, {pipeline_mode = #tpu.pipeline_mode<synchronous>, transform_indices = @transform_3, window_bounds = array<i64: 128, 256>}, {pipeline_mode = #tpu.pipeline_mode<synchronous>, transform_indices = @transform_4, window_bounds = array<i64: 1, 256>}, {pipeline_mode = #tpu.pipeline_mode<synchronous>, transform_indices = @transform_5, window_bounds = array<i64: 256, 64>}, {pipeline_mode = #tpu.pipeline_mode<synchronous>, transform_indices = @transform_6, window_bounds = array<i64: 1, 64>}, {transform_indices = @transform_7, window_bounds = array<i64: 64, 64>}]} {
    %c0 = arith.constant 0 : index
    %c0_0 = arith.constant 0 : index
    %0 = vector.load %arg1[%c0, %c0_0] : memref<64x32xf32, #tpu.memory_space<vmem>>, vector<64x32xf32>
    %1 = arith.truncf %0 : vector<64x32xf32> to vector<64x32xbf16>
    %c0_1 = arith.constant 0 : index
    %c0_2 = arith.constant 0 : index
    %2 = vector.load %arg2[%c0_1, %c0_2] : memref<32x128xbf16, #tpu.memory_space<vmem>>, vector<32x128xbf16>
    %cst = arith.constant dense<0.000000e+00> : vector<64x128xf32>
    %3 = tpu.matmul %1, %2, %cst {dimension_numbers = #tpu.dot_dimension_numbers<[1], [0], [0], [1], [0, 0, 1, 1], [], []>} : vector<64x32xbf16>, vector<32x128xbf16>, vector<64x128xf32> -> vector<64x128xf32>
    %c0_3 = arith.constant 0 : index
    %c0_4 = arith.constant 0 : index
    %4 = vector.load %arg3[%c0_3, %c0_4] : memref<1x128xf32, #tpu.memory_space<vmem>>, vector<1x128xf32>
    %5 = vector.broadcast %4 : vector<1x128xf32> to vector<64x128xf32>
    %6 = arith.addf %3, %5 : vector<64x128xf32>
    %cst_5 = arith.constant 0.000000e+00 : f32
    %7 = vector.broadcast %cst_5 : f32 to vector<64x128xf32>
    %8 = arith.maximumf %6, %7 : vector<64x128xf32>
    %9 = arith.truncf %8 : vector<64x128xf32> to vector<64x128xbf16>
    %c0_6 = arith.constant 0 : index
    %c0_7 = arith.constant 0 : index
    %10 = vector.load %arg4[%c0_6, %c0_7] : memref<128x256xbf16, #tpu.memory_space<vmem>>, vector<128x256xbf16>
    %cst_8 = arith.constant dense<0.000000e+00> : vector<64x256xf32>
    %11 = tpu.matmul %9, %10, %cst_8 {dimension_numbers = #tpu.dot_dimension_numbers<[1], [0], [0], [1], [0, 0, 1, 1], [], []>} : vector<64x128xbf16>, vector<128x256xbf16>, vector<64x256xf32> -> vector<64x256xf32>
    %c0_9 = arith.constant 0 : index
    %c0_10 = arith.constant 0 : index
    %12 = vector.load %arg5[%c0_9, %c0_10] : memref<1x256xf32, #tpu.memory_space<vmem>>, vector<1x256xf32>
    %13 = vector.broadcast %12 : vector<1x256xf32> to vector<64x256xf32>
    %14 = arith.addf %11, %13 : vector<64x256xf32>
    %cst_11 = arith.constant 0.000000e+00 : f32
    %15 = vector.broadcast %cst_11 : f32 to vector<64x256xf32>
    %16 = arith.maximumf %14, %15 : vector<64x256xf32>
    %17 = arith.truncf %16 : vector<64x256xf32> to vector<64x256xbf16>
    %c0_12 = arith.constant 0 : index
    %c0_13 = arith.constant 0 : index
    %18 = vector.load %arg6[%c0_12, %c0_13] : memref<256x64xbf16, #tpu.memory_space<vmem>>, vector<256x64xbf16>
    %cst_14 = arith.constant dense<0.000000e+00> : vector<64x64xf32>
    %19 = tpu.matmul %17, %18, %cst_14 {dimension_numbers = #tpu.dot_dimension_numbers<[1], [0], [0], [1], [0, 0, 1, 1], [], []>} : vector<64x256xbf16>, vector<256x64xbf16>, vector<64x64xf32> -> vector<64x64xf32>
    %c0_15 = arith.constant 0 : index
    %c0_16 = arith.constant 0 : index
    %20 = vector.load %arg7[%c0_15, %c0_16] : memref<1x64xf32, #tpu.memory_space<vmem>>, vector<1x64xf32>
    %21 = vector.broadcast %20 : vector<1x64xf32> to vector<64x64xf32>
    %22 = arith.addf %19, %21 : vector<64x64xf32>
    %c0_17 = arith.constant 0 : index
    %c0_18 = arith.constant 0 : index
    %23 = vector.load %arg8[%c0_17, %c0_18] : memref<64x64xf32, #tpu.memory_space<vmem>>, vector<64x64xf32>
    tpu.vector_store %arg8[%c0_17, %c0_18], %22 {strides = array<i32>} : memref<64x64xf32, #tpu.memory_space<vmem>>, vector<64x64xf32>,
    return
  }
  func.func @transform_0(%arg0: i32) -> (i32, i32) {
    %c0_i32 = arith.constant 0 : i32
    %c0_i32_0 = arith.constant 0 : i32
    return %arg0, %c0_i32 : i32, i32
  }
  func.func @transform_1(%arg0: i32) -> (i32, i32) {
    %c0_i32 = arith.constant 0 : i32
    %c0_i32_0 = arith.constant 0 : i32
    %c0_i32_1 = arith.constant 0 : i32
    return %c0_i32, %c0_i32_0 : i32, i32
  }
  func.func @transform_2(%arg0: i32) -> (i32, i32) {
    %c0_i32 = arith.constant 0 : i32
    %c0_i32_0 = arith.constant 0 : i32
    %c0_i32_1 = arith.constant 0 : i32
    return %c0_i32, %c0_i32_0 : i32, i32
  }
  func.func @transform_3(%arg0: i32) -> (i32, i32) {
    %c0_i32 = arith.constant 0 : i32
    %c0_i32_0 = arith.constant 0 : i32
    %c0_i32_1 = arith.constant 0 : i32
    return %c0_i32, %c0_i32_0 : i32, i32
  }
  func.func @transform_4(%arg0: i32) -> (i32, i32) {
    %c0_i32 = arith.constant 0 : i32
    %c0_i32_0 = arith.constant 0 : i32
    %c0_i32_1 = arith.constant 0 : i32
    return %c0_i32, %c0_i32_0 : i32, i32
  }
  func.func @transform_5(%arg0: i32) -> (i32, i32) {
    %c0_i32 = arith.constant 0 : i32
    %c0_i32_0 = arith.constant 0 : i32
    %c0_i32_1 = arith.constant 0 : i32
    return %c0_i32, %c0_i32_0 : i32, i32
  }
  func.func @transform_6(%arg0: i32) -> (i32, i32) {
    %c0_i32 = arith.constant 0 : i32
    %c0_i32_0 = arith.constant 0 : i32
    %c0_i32_1 = arith.constant 0 : i32
    return %c0_i32, %c0_i32_0 : i32, i32
  }
  func.func @transform_7(%arg0: i32) -> (i32, i32) {
    %c0_i32 = arith.constant 0 : i32
    %c0_i32_0 = arith.constant 0 : i32
    return %arg0, %c0_i32 : i32, i32
  }
}

</mosaic_0001>

<bundles_post_ra>
// kernel: tpu_custom_call.1
= control target key start
LH: loop header
LB: loop body
LE: loop exit
PB: predicated region body
PF: predicated region fallthrough
CT: control target
= control target key end

     0   :  { %vm63_vm0 = vcmask 261120   ;;  %s954_s0 = inlined_call_operand.vmem [shape: f32[64,32], index: 0, kind: input, shape index: {}]   ;;  %s955_s1 = inlined_call_operand.vmem [shape: bf16[32,128], index: 1, kind: input, shape index: {}]   ;;  %s956_s2 = inlined_call_operand.vmem [shape: f32[1,128], index: 2, kind: input, shape index: {}]   ;;  %s957_s3 = inlined_call_operand.vmem [shape: bf16[128,256], index: 3, kind: input, shape index: {}]   ;;  %s958_s4 = inlined_call_operand.vmem [shape: f32[1,256], index: 4, kind: input, shape index: {}]   ;;  %s959_s5 = inlined_call_operand.vmem [shape: bf16[256,64], index: 5, kind: input, shape index: {}]   ;;  %s960_s6 = inlined_call_operand.vmem [shape: f32[1,64], index: 6, kind: input, shape index: {}]   ;;  %s961_s7 = inlined_call_operand.hbm [shape: f32[64,64], index: 7, kind: output, shape index: {}]  }
   0x1   :  { %v685_v0 = vld [vmem:[%s955_s1] sm:$0xff]   ;;  %v686_v1 = vld [vmem:[%s955_s1 + $0x8] sm:$0xff]   ;;  %v30_v5 = vld [vmem:[%s954_s0 + $0x10] sm:$0xff] }
   0x2   :  { %669 = vmatprep.subr.bf16.mxu0 %v685_v0  ;;  %v28_v2 = vld [vmem:[%s954_s0] sm:$0xff]  ;;  %v29_v3 = vld [vmem:[%s954_s0 + $0x8] sm:$0xff]  ;;  %v31_v6 = vld [vmem:[%s954_s0 + $0x18] sm:$0xff] }
   0x3   :  { %670 = vmatpush3.bf16.msra.mxu0 %v685_v0  ;;  %v36_v4 = vpack.c.bf16 %v29_v3, %v28_v2  ;;  %v32_v7 = vld [vmem:[%s954_s0 + $0x20] sm:$0xff]  ;;  %v33_v8 = vld [vmem:[%s954_s0 + $0x28] sm:$0xff]  ;;  %v37_v11 = vpack.c.bf16 %v31_v6, %v30_v5  ;;  %v690_v12 = vld [vmem:[%s957_s3 + $0x14] ss:$8 sps:$4 sm:$0xff]  }
   0x4   :  { %671 = vmatprep.subr.bf16.mxu0 %v686_v1  ;;  %v687_v9 = vld [vmem:[%s957_s3 + $0x4] ss:$8 sps:$4 sm:$0xff]   ;;  %v689_v10 = vld [vmem:[%s957_s3] ss:$8 sps:$4 sm:$0xff]   ;;  %v38_v13 = vpack.c.bf16 %v33_v8, %v32_v7  ;;  %v692_v14 = vld [vmem:[%s957_s3 + $0x10] ss:$8 sps:$4 sm:$0xff]  }
   0x5   :  { %673 = vmatprep.mubr.msk.bf16.mxu0 %vm63_vm0, %v36_v4  ;;  %261 = vmatprep.subr.bf16.mxu1 %v687_v9  ;;  %v693_v15 = vld [vmem:[%s957_s3 + $0x24] ss:$8 sps:$4 sm:$0xff]   ;;  %v34_v16 = vld [vmem:[%s954_s0 + $0x30] sm:$0xff]  ;;  %v35_v17 = vld [vmem:[%s954_s0 + $0x38] sm:$0xff] }
   0x6   :  { %262 = vmatpush1.bf16.msra.mxu1 %v689_v10  ;;  %v695_v18 = vld [vmem:[%s957_s3 + $0x20] ss:$8 sps:$4 sm:$0xff]   ;;  %v696_v19 = vld [vmem:[%s957_s3 + $0x34] ss:$8 sps:$4 sm:$0xff]   ;;  %v39_v20 = vpack.c.bf16 %v35_v17, %v34_v16  ;;  %v698_v21 = vld [vmem:[%s957_s3 + $0x30] ss:$8 sps:$4 sm:$0xff]  }
   0x7   :  { %672 = vmatpush3.bf16.msra.mxu0 %v686_v1  ;;  %263 = vmatprep.subr.bf16.mxu1 %v690_v12  ;;  %v699_v22 = vld [vmem:[%s957_s3 + $0x44] ss:$8 sps:$4 sm:$0xff]   ;;  %v701_v23 = vld [vmem:[%s957_s3 + $0x40] ss:$8 sps:$4 sm:$0xff]   ;;  %v702_v24 = vld [vmem:[%s957_s3 + $0x54] ss:$8 sps:$4 sm:$0xff]  }
   0x8   :  { %v704_v25 = vld [vmem:[%s957_s3 + $0x50] ss:$8 sps:$4 sm:$0xff]  }
   0xa   :  { %674 = vmatmul.mubr.msk.bf16.vlgmr.msra.gmra.mrb[0].mxu0 %vm63_vm0, %v37_v11  ;;  %264 = vmatpush1.bf16.msra.mxu1 %v692_v14 }
   0xb   :  { %677 = vmatprep.mubr.msk.bf16.mxu0 %vm63_vm0, %v38_v13  ;;  %265 = vmatprep.subr.bf16.mxu1 %v693_v15 }
   0xe   :  { %266 = vmatpush1.bf16.msra.mxu1 %v695_v18 }
   0xf   :  { %267 = vmatprep.subr.bf16.mxu1 %v696_v19 }
  0x12   :  { %678 = vmatmul.mubr.msk.bf16.gmra.mrb[4].mxu0 %vm63_vm0, %v39_v20  ;;  %268 = vmatpush1.bf16.msra.mxu1 %v698_v21 }
  0x13   :  { %269 = vmatprep.subr.bf16.mxu1 %v699_v22 }
  0x16   :  { %270 = vmatpush1.bf16.msra.mxu1 %v701_v23 }
  0x17   :  { %12 = vsyncpa [#allocation3], 0  ;;  %271 = vmatprep.subr.bf16.mxu1 %v702_v24  ;;  %v705_v26 = vld [vmem:[%s957_s3 + $0x64] ss:$8 sps:$4 sm:$0xff]   ;;  %v707_v27 = vld [vmem:[%s957_s3 + $0x60] ss:$8 sps:$4 sm:$0xff]   ;;  %v171_v12 = vlaneseq }
  0x18   :  { %v708_v28 = vld [vmem:[%s957_s3 + $0x74] ss:$8 sps:$4 sm:$0xff]   ;;  %v710_v29 = vld [vmem:[%s957_s3 + $0x70] ss:$8 sps:$4 sm:$0xff]   ;;  %v751_v30 = vmov 0   ;;  %v711_v31 = vld [vmem:[%s959_s5 + $0x40] sm:$0xff]  }
  0x19   :  { %293 = vmatprep.mubr.bf16.mxu1 %v751_v30  ;;  %v712_v32 = vld [vmem:[%s959_s5] sm:$0xff]   ;;  %v713_v33 = vld [vmem:[%s959_s5 + $0x48] sm:$0xff]   ;;  %629 = vmatprep.subr.bf16.mxu0 %v711_v31  ;;  %v715_v35 = vld [vmem:[%s959_s5 + $0x50] sm:$0xff]   ;;  %v172_v13 = vshrl.u32 %v171_v12, 7  ;;  %vm558_vm1 = vcmask 523264  }
  0x1a   :  { %272 = vmatpush1.bf16.msra.mxu1 %v704_v25  ;;  %630 = vmatpush3.bf16.msra.mxu0 %v712_v32  ;;  %v714_v34 = vld [vmem:[%s959_s5 + $0x8] sm:$0xff]   ;;  %v716_v36 = vld [vmem:[%s959_s5 + $0x10] sm:$0xff]   ;;  %v717_v37 = vld [vmem:[%s959_s5 + $0x58] sm:$0xff]  }
  0x1b   :  { %273 = vmatprep.subr.bf16.mxu1 %v705_v26  ;;  %631 = vmatprep.subr.bf16.mxu0 %v713_v33  ;;  %v718_v38 = vld [vmem:[%s959_s5 + $0x18] sm:$0xff]   ;;  %v719_v39 = vld [vmem:[%s959_s5 + $0x60] sm:$0xff]   ;;  %v721_v41 = vld [vmem:[%s959_s5 + $0x68] sm:$0xff]   ;;  %v173_v14 = vsub.s32 0, %v172_v13  ;;  %v177_v16 = vsub.s32 1, %v172_v13 }
  0x1c   :  { %v720_v40 = vld [vmem:[%s959_s5 + $0x20] sm:$0xff]   ;;  %v722_v7 = vld [vmem:[%s959_s5 + $0x28] sm:$0xff]   ;;  %v723_v8 = vld [vmem:[%s959_s5 + $0x70] sm:$0xff]  }
  0x1d   :  { %v583_v42 = vld [vmem:[%s956_s2] ss:$0 sm:$0xff]  ;;  %v724_v9 = vld [vmem:[%s959_s5 + $0x30] sm:$0xff]   ;;  %v725_v10 = vld [vmem:[%s959_s5 + $0x78] sm:$0xff]  }
  0x1e   :  { %274 = vmatpush1.bf16.msra.mxu1 %v707_v27  ;;  %632 = vmatpush3.bf16.msra.mxu0 %v714_v34  ;;  %v726_v11 = vld [vmem:[%s959_s5 + $0x38] sm:$0xff]   ;;  %v169_v15 = vld [vmem:[%s958_s4] sm:$0x3] }
  0x1f   :  { %275 = vmatprep.subr.bf16.mxu1 %v708_v28  ;;  %633 = vmatprep.subr.bf16.mxu0 %v715_v35  ;;  %v174_v17 = vrot.slane %v169_v15, %v173_v14  ;;  %v178_v18 = vrot.slane %v169_v15, %v177_v16  ;;  %v606_v12 = vld [vmem:[%s960_s6] ss:$0 sm:$0xff]  ;;  %s752_s6 = smov [#allocation2]  }
  0x20   :  { %s572_s12 = sshll.u32 %s752_s6, 4  ;;  %s573_s12 = int_to_ptr.vmem [resolvable:$true] %s572_s12 }
  0x21   :  { %s727_s1 = scalar_lea.vmem %s573_s12, 1024  ;;  %p732_p1 = scmp.lt.s32.totalorder %s573_s12, %s573_s12 }
  0x22   :  { %276 = vmatpush1.bf16.msra.mxu1 %v710_v29  ;;  %634 = vmatpush3.bf16.msra.mxu0 %v716_v36  ;;  %p728_p0 = scmp.ne.s32.totalorder %s573_s12, %s727_s1  ;;  %p733_p2 = scmp.lt.s32.totalorder %s727_s1, %s727_s1 }
  0x23   :  { %635 = vmatprep.subr.bf16.mxu0 %v717_v37 }
  0x24   :  { %p734_p3 = por %p733_p2, %p732_p1 }
  0x26   :  { %636 = vmatpush3.bf16.msra.mxu0 %v718_v38  ;;  %p735_p4 = pnand %p734_p3, %p728_p0 }
  0x27   :  { %637 = vmatprep.subr.bf16.mxu0 %v719_v39 }
  0x2a   :  { %638 = vmatpush3.bf16.msra.mxu0 %v720_v40 }
  0x2b   :  { %639 = vmatprep.subr.bf16.mxu0 %v721_v41 }
  0x2e   :  { %640 = vmatpush3.bf16.msra.mxu0 %v722_v7 }
  0x2f   :  { %641 = vmatprep.subr.bf16.mxu0 %v723_v8 }
  0x32   :  { %642 = vmatpush3.bf16.msra.mxu0 %v724_v9 }
  0x33   :  { %643 = vmatprep.subr.bf16.mxu0 %v725_v10 }
  0x36   :  { %644 = vmatpush3.bf16.msra.mxu0 %v726_v11 }
  0xdd   :  { %v675_v43 = vpop.f32.mrb[0].mxu0 }
  0xde   :  { %v119_v44 = vadd.f32 %v675_v43, %v583_v42  ;;  %v110_v45 = vpop.f32.mrb[1].mxu0 }
  0xdf   :  { %v111_v46 = vadd.f32 %v583_v42, %v110_v45  ;;  %v676_v47 = vpop.f32.mrb[2].mxu0 }
  0xe0   :  { %v122_v48 = vadd.f32 %v676_v47, %v583_v42  ;;  %v113_v49 = vpop.f32.mrb[3].mxu0  ;;  %v143_v51 = vmax.f32 %v119_v44, 0.0 }
  0xe1   :  { %v114_v50 = vadd.f32 %v583_v42, %v113_v49  ;;  %v141_v53 = vmax.f32 %v111_v46, 0.0 }
  0xe2   :  { %v144_v52 = vmax.f32 %v122_v48, 0.0 }
  0xe3   :  { %v142_v54 = vmax.f32 %v114_v50, 0.0 }
  0xe4   :  { %v150_v55 = vpack.c.bf16 %v144_v52, %v143_v51 }
  0xe5   :  { %v149_v56 = vpack.c.bf16 %v142_v54, %v141_v53  ;;  %v679_v57 = vpop.f32.mrb[4].mxu0 }
  0xe6   :  { %v135_v58 = vadd.f32 %v679_v57, %v583_v42  ;;  %v126_v59 = vpop.f32.mrb[5].mxu0 }
  0xe7   :  { %294 = vmatmul.mubr.bf16.vlgmr.msra.gmra.mrb[0].mxu1 %v149_v56  ;;  %v127_v60 = vadd.f32 %v583_v42, %v126_v59  ;;  %v680_v61 = vpop.f32.mrb[6].mxu0 }
  0xe8   :  { %v147_v62 = vmax.f32 %v135_v58, 0.0  ;;  %v138_v63 = vadd.f32 %v680_v61, %v583_v42  ;;  %v129_v0 = vpop.f32.mrb[7].mxu0  ;;  %303 = vmatprep.mubr.bf16.mxu1 %v751_v30 }
  0xe9   :  { %v145_v1 = vmax.f32 %v127_v60, 0.0  ;;  %v130_v2 = vadd.f32 %v583_v42, %v129_v0 }
  0xea   :  { %v148_v3 = vmax.f32 %v138_v63, 0.0 }
  0xeb   :  { %v146_v4 = vmax.f32 %v130_v2, 0.0 }
  0xec   :  { %v152_v5 = vpack.c.bf16 %v148_v3, %v147_v62 }
  0xed   :  { %v151_v6 = vpack.c.bf16 %v146_v4, %v145_v1 }
  0xef   :  { %304 = vmatmul.mubr.bf16.gmra.mrb[4].mxu1 %v150_v55 }
  0xf0   :  { %313 = vmatprep.mubr.bf16.mxu1 %v751_v30 }
  0xf7   :  { %314 = vmatmul.mubr.bf16.gmra.mrb[8].mxu1 %v151_v6 }
  0xf8   :  { %323 = vmatprep.mubr.bf16.mxu1 %v751_v30 }
  0xff   :  { %324 = vmatmul.mubr.bf16.gmra.mrb[12].mxu1 %v152_v5 }
 0x1ba   :  { %v295_v19 = vpop.f32.mrb[0].mxu1 }
 0x1bb   :  { %v296_v20 = vadd.f32 %v295_v19, %v174_v17  ;;  %v297_v21 = vpop.f32.mrb[1].mxu1 }
 0x1bc   :  { %v298_v22 = vadd.f32 %v297_v21, %v178_v18  ;;  %v299_v23 = vpop.f32.mrb[2].mxu1 }
 0x1bd   :  { %v300_v24 = vadd.f32 %v299_v23, %v174_v17  ;;  %v301_v25 = vpop.f32.mrb[3].mxu1  ;;  %v334_v27 = vmax.f32 %v296_v20, 0.0 }
 0x1be   :  { %v302_v26 = vadd.f32 %v301_v25, %v178_v18  ;;  %v335_v29 = vmax.f32 %v298_v22, 0.0 }
 0x1bf   :  { %v336_v28 = vmax.f32 %v300_v24, 0.0 }
 0x1c0   :  { %v337_v30 = vmax.f32 %v302_v26, 0.0 }
 0x1c1   :  { %v350_v31 = vpack.c.bf16 %v336_v28, %v334_v27 }
 0x1c2   :  { %v351_v32 = vpack.c.bf16 %v337_v30, %v335_v29  ;;  %v305_v33 = vpop.f32.mrb[4].mxu1 }
 0x1c3   :  { %v306_v34 = vadd.f32 %v305_v33, %v174_v17  ;;  %v307_v35 = vpop.f32.mrb[5].mxu1 }
 0x1c4   :  { %v308_v36 = vadd.f32 %v307_v35, %v178_v18  ;;  %v309_v37 = vpop.f32.mrb[6].mxu1  ;;  %525 = vmatprep.mubr.bf16.mxu0 %v351_v32 }
 0x1c5   :  { %v310_v38 = vadd.f32 %v309_v37, %v174_v17  ;;  %v311_v39 = vpop.f32.mrb[7].mxu1  ;;  %526 = vmatmul.mubr.bf16.vlgmr.msra.gmra.mrb[8].mxu0 %v350_v31  ;;  %v338_v41 = vmax.f32 %v306_v34, 0.0 }
 0x1c6   :  { %v312_v40 = vadd.f32 %v311_v39, %v178_v18  ;;  %v339_v43 = vmax.f32 %v308_v36, 0.0 }
 0x1c7   :  { %v340_v42 = vmax.f32 %v310_v38, 0.0 }
 0x1c8   :  { %v341_v44 = vmax.f32 %v312_v40, 0.0 }
 0x1c9   :  { %v352_v45 = vpack.c.bf16 %v340_v42, %v338_v41 }
 0x1ca   :  { %v353_v46 = vpack.c.bf16 %v341_v44, %v339_v43  ;;  %v315_v47 = vpop.f32.mrb[8].mxu1 }
 0x1cb   :  { %v316_v48 = vadd.f32 %v315_v47, %v174_v17  ;;  %v317_v49 = vpop.f32.mrb[9].mxu1 }
 0x1cc   :  { %v318_v50 = vadd.f32 %v317_v49, %v178_v18  ;;  %v319_v51 = vpop.f32.mrb[10].mxu1  ;;  %533 = vmatprep.mubr.bf16.mxu0 %v353_v46 }
 0x1cd   :  { %v320_v52 = vadd.f32 %v319_v51, %v174_v17  ;;  %v321_v53 = vpop.f32.mrb[11].mxu1  ;;  %534 = vmatmul.mubr.bf16.gmra.mrb[12].mxu0 %v352_v45  ;;  %v342_v55 = vmax.f32 %v316_v48, 0.0 }
 0x1ce   :  { %v322_v54 = vadd.f32 %v321_v53, %v178_v18  ;;  %v343_v57 = vmax.f32 %v318_v50, 0.0 }
 0x1cf   :  { %v344_v56 = vmax.f32 %v320_v52, 0.0 }
 0x1d0   :  { %v345_v58 = vmax.f32 %v322_v54, 0.0 }
 0x1d1   :  { %v354_v59 = vpack.c.bf16 %v344_v56, %v342_v55 }
 0x1d2   :  { %v355_v60 = vpack.c.bf16 %v345_v58, %v343_v57  ;;  %v325_v61 = vpop.f32.mrb[12].mxu1 }
 0x1d3   :  { %v326_v62 = vadd.f32 %v325_v61, %v174_v17  ;;  %v327_v63 = vpop.f32.mrb[13].mxu1 }
 0x1d4   :  { %v328_v0 = vadd.f32 %v327_v63, %v178_v18  ;;  %v329_v1 = vpop.f32.mrb[14].mxu1  ;;  %541 = vmatprep.mubr.bf16.mxu0 %v355_v60 }
 0x1d5   :  { %v330_v2 = vadd.f32 %v329_v1, %v174_v17  ;;  %v331_v3 = vpop.f32.mrb[15].mxu1  ;;  %542 = vmatmul.mubr.bf16.gmra.mrb[16].mxu0 %v354_v59  ;;  %v346_v5 = vmax.f32 %v326_v62, 0.0 }
 0x1d6   :  { %v332_v4 = vadd.f32 %v331_v3, %v178_v18  ;;  %v347_v7 = vmax.f32 %v328_v0, 0.0 }
 0x1d7   :  { %v348_v6 = vmax.f32 %v330_v2, 0.0 }
 0x1d8   :  { %v349_v8 = vmax.f32 %v332_v4, 0.0 }
 0x1d9   :  { %v356_v9 = vpack.c.bf16 %v348_v6, %v346_v5 }
 0x1da   :  { %v357_v10 = vpack.c.bf16 %v349_v8, %v347_v7 }
 0x1dc   :  { %549 = vmatprep.mubr.bf16.mxu0 %v357_v10 }
 0x1dd   :  { %550 = vmatmul.mubr.bf16.gmra.mrb[20].mxu0 %v356_v9 }
 0x298   :  { %v645_v11 = vpop.f32.mrb[8].mxu0 }
 0x299   :  { %v646_v13 = vpop.f32.mrb[9].mxu0 }
 0x29a   :  { %v647_v14 = vadd.f32 %v646_v13, %v645_v11  ;;  %v648_v15 = vpop.f32.mrb[10].mxu0 }
 0x29b   :  { %v649_v16 = vpop.f32.mrb[11].mxu0 }
 0x29c   :  { %v528_v17 = vadd.f32 %v647_v14, %v606_v12  ;;  %v650_v18 = vadd.f32 %v649_v16, %v648_v15 }
 0x29e   :  { %559 = vst.msk [vmem:[#allocation2] sm:$0xff] %vm558_vm1, %v528_v17  ;;  %v531_v19 = vadd.f32 %v650_v18, %v606_v12 }
 0x2a0   :  { %560 = vst.msk [vmem:[#allocation2 + $0x8] sm:$0xff] %vm558_vm1, %v531_v19  ;;  %v651_v20 = vpop.f32.mrb[12].mxu0 }
 0x2a1   :  { %v652_v21 = vpop.f32.mrb[13].mxu0 }
 0x2a2   :  { %v653_v22 = vadd.f32 %v652_v21, %v651_v20  ;;  %v654_v23 = vpop.f32.mrb[14].mxu0 }
 0x2a3   :  { %v655_v24 = vpop.f32.mrb[15].mxu0 }
 0x2a4   :  { %v536_v25 = vadd.f32 %v653_v22, %v606_v12  ;;  %v656_v26 = vadd.f32 %v655_v24, %v654_v23 }
 0x2a6   :  { %561 = vst.msk [vmem:[#allocation2 + $0x10] sm:$0xff] %vm558_vm1, %v536_v25  ;;  %v539_v27 = vadd.f32 %v656_v26, %v606_v12 }
 0x2a8   :  { %562 = vst.msk [vmem:[#allocation2 + $0x18] sm:$0xff] %vm558_vm1, %v539_v27  ;;  %v657_v28 = vpop.f32.mrb[16].mxu0 }
 0x2a9   :  { %v658_v29 = vpop.f32.mrb[17].mxu0 }
 0x2aa   :  { %v659_v30 = vadd.f32 %v658_v29, %v657_v28  ;;  %v660_v31 = vpop.f32.mrb[18].mxu0 }
 0x2ab   :  { %v661_v32 = vpop.f32.mrb[19].mxu0 }
 0x2ac   :  { %v544_v33 = vadd.f32 %v659_v30, %v606_v12  ;;  %v662_v34 = vadd.f32 %v661_v32, %v660_v31 }
 0x2ae   :  { %563 = vst.msk [vmem:[#allocation2 + $0x20] sm:$0xff] %vm558_vm1, %v544_v33  ;;  %v547_v35 = vadd.f32 %v662_v34, %v606_v12 }
 0x2b0   :  { %564 = vst.msk [vmem:[#allocation2 + $0x28] sm:$0xff] %vm558_vm1, %v547_v35  ;;  %v663_v36 = vpop.f32.mrb[20].mxu0 }
 0x2b1   :  { %v664_v37 = vpop.f32.mrb[21].mxu0 }
 0x2b2   :  { %v665_v38 = vadd.f32 %v664_v37, %v663_v36  ;;  %v666_v39 = vpop.f32.mrb[22].mxu0 }
 0x2b3   :  { %v667_v40 = vpop.f32.mrb[23].mxu0 }
 0x2b4   :  { %v552_v41 = vadd.f32 %v665_v38, %v606_v12  ;;  %v668_v42 = vadd.f32 %v667_v40, %v666_v39 }
 0x2b6   :  { %565 = vst.msk [vmem:[#allocation2 + $0x30] sm:$0xff] %vm558_vm1, %v552_v41  ;;  %v555_v43 = vadd.f32 %v668_v42, %v606_v12 }
 0x2b8   :  { %566 = vst.msk [vmem:[#allocation2 + $0x38] sm:$0xff] %vm558_vm1, %v555_v43 }
 0x2b9   :  { %738 = shalt.err (!%p735_p4)
}
 0x2ba   :  { %s739_s14 = scalar_lea.hbm %s961_s7, 1024 }
 0x2bb   :  { %p740_p5 = scmp.ne.s32.totalorder %s961_s7, %s739_s14  ;;  %p743_p6 = scmp.lt.u32.totalorder %s739_s14, %s961_s7 }
 0x2bd   :  { %p745_p7 = pnand %p743_p6, %p740_p5 }
 0x2bf   :  { %748 = shalt.err (!%p745_p7)
}
 0x2c0   :  { %s753_s19 = smov 128   ;;  %s754_s20 = smov 8  }
 0x2c1   :  { %578 = dma.vmem_to_hbm [thread:$0]  %s573_s12, 1024, %s961_s7, [#allocation3], %s753_s19, %s753_s19, %s754_s20  }
 0x2c2   :  { %749 = dma.done.wait [#allocation3], 1024  }
 0x2c3   :  { %750 = vsyncadd [#allocation3], 4294966272 }
 0x2c4   :  { %582 = vsyncpa [#allocation3], 1 }

</bundles_post_ra>
